<compile_context>
chip_gen: v7x
topology: tpu7x:2x2x1
jax: 0.10.0
libtpu: 0.0.40
codegen_flags: <defaults>
</compile_context>

<pallas_src>
import math

import jax
import jax.numpy as jnp
from jax.experimental import pallas as pl
from jax.experimental.pallas import tpu as pltpu


def _ewl_kernel(x_ref, w_ref, b_ref, o_ref):
    # x_ref: (TM, TN) in x's native dtype (cast happens on the tile, in VMEM);
    # w_ref/b_ref: (1, TN) pre-cast to the compute dtype, broadcast over
    # sublanes. Pure VPU work.
    x = x_ref[...].astype(o_ref.dtype)
    o_ref[...] = x * w_ref[...] + b_ref[...]


def _round_up(v, m):
    return -(-v // m) * m


def _chip_config():
    """(target_block_bytes, vmem_limit_bytes, row_shards) per TPU generation."""
    kind = ""
    try:
        kind = jax.devices()[0].device_kind.lower()
    except Exception:
        pass
    if "v7" in kind:
        # 2 TCs, ~3.2 TB/s HBM: bigger blocks amortize the ~0.35us/step grid
        # overhead. 64 MiB physical VMEM, 32 MiB scoped default -> explicit
        # limit. >=4 row tiles keep both TCs balanced with a ragged last tile.
        return 4 << 20, 48 << 20, 4
    if "v6" in kind:
        # Single TC, 128 MiB VMEM: 4 MiB blocks, raise the scoped limit.
        return 4 << 20, 48 << 20, 1
    # v5e (16 MiB scoped default) or unknown backend: conservative 2 MiB blocks.
    return 2 << 20, None, 1


def element_wise_linear(x, weight=None, bias=None, *,
                        target_block_bytes=None, vmem_limit_bytes=None):
    """ElementWiseLinear forward: y = x * weight + bias (broadcast over last dim).

    weight=None / bias=None mirror the module's weight=False / bias=False
    (no multiply / no add).
    """
    orig_shape = x.shape
    size = orig_shape[-1]

    # Identity short-circuit: no params -> forward is a no-op; skip the HBM pass.
    if weight is None and bias is None:
        return x

    if weight is None:
        weight = jnp.ones((size,), dtype=x.dtype)
    if bias is None:
        bias = jnp.zeros((size,), dtype=x.dtype)

    # Match PyTorch type promotion (bf16 x with f32 params -> f32 compute/out).
    cdtype = jnp.result_type(x.dtype, weight.dtype, bias.dtype)

    if x.size == 0:
        return x.astype(cdtype)

    # x stays in its native dtype (cast happens per-tile inside the kernel).
    x2 = x.reshape(-1, size)
    n = x2.shape[0]
    w = weight.astype(cdtype)
    b = bias.astype(cdtype)

    # Lane-dense packing: fold g rows so the packed width g*size is a multiple
    # of 128 lanes (unmasked vector stores). Works for any size whenever the
    # row count divides evenly by g.
    g = 128 // math.gcd(size, 128)
    if g > 1 and n % g == 0:
        x2 = x2.reshape(n // g, g * size)
        w_row = jnp.tile(w, g).reshape(1, g * size)
        b_row = jnp.tile(b, g).reshape(1, g * size)
    else:
        w_row = w.reshape(1, size)
        b_row = b.reshape(1, size)

    rows, cols = x2.shape
    in_itemsize = jnp.dtype(x2.dtype).itemsize
    out_itemsize = jnp.dtype(cdtype).itemsize
    per_elem = in_itemsize + out_itemsize  # one input + one output element

    cfg_block, cfg_vmem, row_shards = _chip_config()
    if target_block_bytes is None:
        target_block_bytes = cfg_block
    if vmem_limit_bytes is None:
        vmem_limit_bytes = cfg_vmem

    # Double-buffered working-set budget (in + out blocks, 2 buffers each),
    # with headroom for weight/bias blocks and compiler scratch.
    vmem_budget = vmem_limit_bytes if vmem_limit_bytes is not None else (16 << 20)
    usable = (vmem_budget * 3) // 4

    # Prefer full-width blocks: contiguous DMAs, 1-D grid, w/b DMA'd exactly once.
    if 2 * 32 * cols * per_elem <= usable:
        tn = cols
    else:
        # Very wide rows: largest 128-multiple whose 32-row block still fits.
        tn = (usable // (2 * 32 * per_elem)) // 128 * 128
        tn = max(128, min(tn, (cols // 128) * 128))

    # Row tile: ~target_block_bytes of output per block, a multiple of 32
    # sublanes, bounded by the VMEM budget. v7x only: keep >= row_shards row
    # tiles so the two TensorCores share the row axis evenly.
    rows_padded = _round_up(rows, 32)
    tm = max(32, (target_block_bytes // max(1, tn * out_itemsize)) // 32 * 32)
    tm_vmem = max(32, (usable // (2 * tn * per_elem)) // 32 * 32)
    tm = min(tm, tm_vmem)
    if row_shards > 1 and rows_padded > 32 * row_shards:
        tm = min(tm, _round_up(-(-rows_padded // row_shards), 32))
    tm = min(tm, rows_padded)

    if tn == cols:
        grid = (pl.cdiv(rows, tm),)
        in_specs = [
            pl.BlockSpec((tm, tn), lambda i: (i, 0)),
            pl.BlockSpec((1, tn), lambda i: (0, 0)),
            pl.BlockSpec((1, tn), lambda i: (0, 0)),
        ]
        out_specs = pl.BlockSpec((tm, tn), lambda i: (i, 0))
        dim_sem = ("parallel",)
    else:
        # Row axis fastest-varying so the tiny (1, tn) w/b block index stays
        # constant across consecutive steps (Pallas skips the re-DMA).
        grid = (pl.cdiv(cols, tn), pl.cdiv(rows, tm))
        in_specs = [
            pl.BlockSpec((tm, tn), lambda j, i: (i, j)),
            pl.BlockSpec((1, tn), lambda j, i: (0, j)),
            pl.BlockSpec((1, tn), lambda j, i: (0, j)),
        ]
        out_specs = pl.BlockSpec((tm, tn), lambda j, i: (i, j))
        dim_sem = ("parallel", "parallel")

    out = pl.pallas_call(
        _ewl_kernel,
        out_shape=jax.ShapeDtypeStruct((rows, cols), cdtype),
        grid_spec=pltpu.PrefetchScalarGridSpec(
            num_scalar_prefetch=0,
            grid=grid,
            in_specs=in_specs,
            out_specs=out_specs,
        ),
        compiler_params=pltpu.CompilerParams(
            dimension_semantics=dim_sem,
            vmem_limit_bytes=vmem_limit_bytes,
        ),
    )(x2, w_row, b_row)

    return out.reshape(orig_shape)


if __name__ == "__main__":
    key = jax.random.PRNGKey(0)
    n, size = 8, 32  # small GNN-ish shapes: 8 nodes, hidden size 32

    x = jax.random.normal(key, (n, size), dtype=jnp.float32)

    # reset_parameters(): weight = ones, bias = zeros.
    weight = jnp.ones((size,), dtype=jnp.float32)
    bias = jnp.zeros((size,), dtype=jnp.float32)

    y = jax.block_until_ready(element_wise_linear(x, weight, bias))
    assert y.shape == x.shape and y.dtype == x.dtype
    assert jnp.allclose(y, x * weight + bias, atol=1e-6), "packed path mismatch"

    # General (non-packed, ragged-row) path: size=160, rows=10 (10 % 4 != 0).
    k1, k2, k3 = jax.random.split(key, 3)
    xg = jax.random.normal(k1, (10, 160), dtype=jnp.float32)
    wg = jax.random.normal(k2, (160,), dtype=jnp.float32)
    bg = jax.random.normal(k3, (160,), dtype=jnp.float32)
    yg = jax.block_until_ready(element_wise_linear(xg, wg, bg))
    assert jnp.allclose(yg, xg * wg + bg, atol=1e-6), "general path mismatch"

    # Mixed dtype: bf16 activations, f32 params -> f32 output, cast in-kernel.
    xb = x.astype(jnp.bfloat16)
    wm = jax.random.normal(k2, (size,), dtype=jnp.float32)
    bm = jax.random.normal(k3, (size,), dtype=jnp.float32)
    ym = jax.block_until_ready(element_wise_linear(xb, wm, bm))
    assert ym.dtype == jnp.float32
    assert jnp.allclose(ym, xb.astype(jnp.float32) * wm + bm, atol=1e-6), \
        "mixed-dtype path mismatch"

    # Identity short-circuit (weight=False, bias=False in the module).
    yi = jax.block_until_ready(element_wise_linear(x))
    assert jnp.array_equal(yi, x)

    print("KERNEL_OK")
</pallas_src>

<mosaic_0001>
module attributes {stable_mosaic.version = 11 : i64} {
  func.func @_ewl_kernel(%arg0: i32, %arg1: memref<32x128xf32, #tpu.memory_space<vmem>>, %arg2: memref<1x128xf32, #tpu.memory_space<vmem>>, %arg3: memref<1x128xf32, #tpu.memory_space<vmem>>, %arg4: memref<32x128xf32, #tpu.memory_space<vmem>>) attributes {dimension_semantics = [#tpu.dimension_semantics<parallel>], iteration_bounds = array<i64: 1>, scalar_prefetch = 0 : i64, scratch_operands = 0 : i64, tpu.core_type = #tpu.core_type<tc>, window_params = [{transform_indices = @transform_0, window_bounds = array<i64: 32, 128>}, {pipeline_mode = #tpu.pipeline_mode<synchronous>, transform_indices = @transform_1, window_bounds = array<i64: 1, 128>}, {pipeline_mode = #tpu.pipeline_mode<synchronous>, transform_indices = @transform_2, window_bounds = array<i64: 1, 128>}, {transform_indices = @transform_3, window_bounds = array<i64: 32, 128>}]} {
    %c0 = arith.constant 0 : index
    %c0_0 = arith.constant 0 : index
    %0 = vector.load %arg1[%c0, %c0_0] : memref<32x128xf32, #tpu.memory_space<vmem>>, vector<32x128xf32>
    %c0_1 = arith.constant 0 : index
    %c0_2 = arith.constant 0 : index
    %1 = vector.load %arg2[%c0_1, %c0_2] : memref<1x128xf32, #tpu.memory_space<vmem>>, vector<1x128xf32>
    %2 = vector.broadcast %1 : vector<1x128xf32> to vector<32x128xf32>
    %3 = arith.mulf %0, %2 : vector<32x128xf32>
    %c0_3 = arith.constant 0 : index
    %c0_4 = arith.constant 0 : index
    %4 = vector.load %arg3[%c0_3, %c0_4] : memref<1x128xf32, #tpu.memory_space<vmem>>, vector<1x128xf32>
    %5 = vector.broadcast %4 : vector<1x128xf32> to vector<32x128xf32>
    %6 = arith.addf %3, %5 : vector<32x128xf32>
    %c0_5 = arith.constant 0 : index
    %c0_6 = arith.constant 0 : index
    %7 = vector.load %arg4[%c0_5, %c0_6] : memref<32x128xf32, #tpu.memory_space<vmem>>, vector<32x128xf32>
    tpu.vector_store %arg4[%c0_5, %c0_6], %6 {strides = array<i32>} : memref<32x128xf32, #tpu.memory_space<vmem>>, vector<32x128xf32>,
    return
  }
  func.func @transform_0(%arg0: i32) -> (i32, i32) {
    %c0_i32 = arith.constant 0 : i32
    %c0_i32_0 = arith.constant 0 : i32
    return %arg0, %c0_i32 : i32, i32
  }
  func.func @transform_1(%arg0: i32) -> (i32, i32) {
    %c0_i32 = arith.constant 0 : i32
    %c0_i32_0 = arith.constant 0 : i32
    %c0_i32_1 = arith.constant 0 : i32
    return %c0_i32, %c0_i32_0 : i32, i32
  }
  func.func @transform_2(%arg0: i32) -> (i32, i32) {
    %c0_i32 = arith.constant 0 : i32
    %c0_i32_0 = arith.constant 0 : i32
    %c0_i32_1 = arith.constant 0 : i32
    return %c0_i32, %c0_i32_0 : i32, i32
  }
  func.func @transform_3(%arg0: i32) -> (i32, i32) {
    %c0_i32 = arith.constant 0 : i32
    %c0_i32_0 = arith.constant 0 : i32
    return %arg0, %c0_i32 : i32, i32
  }
}

</mosaic_0001>

<bundles_post_ra>
// kernel: tpu_custom_call.1
= control target key start
LH: loop header
LB: loop body
LE: loop exit
PB: predicated region body
PF: predicated region fallthrough
CT: control target
= control target key end

     0   :  { %8 = vsyncpa [#allocation3], 0  ;;  %s190_s0 = inlined_call_operand.hbm [shape: f32[2,128], index: 0, kind: input, shape index: {}]   ;;  %s191_s1 = inlined_call_operand.vmem [shape: f32[1,128], index: 1, kind: input, shape index: {}]   ;;  %s192_s2 = inlined_call_operand.vmem [shape: f32[1,128], index: 2, kind: input, shape index: {}]   ;;  %s193_s3 = inlined_call_operand.hbm [shape: f32[2,128], index: 3, kind: output, shape index: {}]  }
   0x1   :  { %9 = vsyncpa [#allocation4], 0 }
   0x2   :  { %14 = vsyncadd [#allocation3], 480  ;;  %s130_s12 = smov [#allocation2]   ;;  %s82_s16 = scalar_lea.hbm %s190_s0, 32 }
   0x3   :  { %s15_s13 = sshll.u32 %s130_s12, 4  ;;  %p83_p0 = scmp.ne.s32.totalorder %s190_s0, %s82_s16  ;;  %s16_s13 = int_to_ptr.vmem [resolvable:$true] %s15_s13 }
   0x4   :  { %p86_p1 = scmp.lt.u32.totalorder %s82_s16, %s190_s0 }
   0x6   :  { %p88_p2 = pnand %p86_p1, %p83_p0 }
   0x8   :  { %91 = shalt.err (!%p88_p2)
}
   0x9   :  { %s92_s21 = scalar_lea.vmem %s16_s13, 32  ;;  %s96_s22 = scalar_lea.vmem %s16_s13, 512 }
   0xa   :  { %p93_p3 = scmp.ne.s32.totalorder %s16_s13, %s92_s21  ;;  %p97_p4 = scmp.lt.s32.totalorder %s16_s13, %s16_s13 }
   0xb   :  { %p98_p5 = scmp.lt.s32.totalorder %s96_s22, %s92_s21 }
   0xd   :  { %p99_p6 = por %p98_p5, %p97_p4 }
   0xf   :  { %p100_p7 = pnand %p99_p6, %p93_p3 }
  0x11   :  { %103 = shalt.err (!%p100_p7)
}
  0x12   :  { %s131_s23 = smov 32   ;;  %s132_s24 = smov 2  }
  0x13   :  { %21 = dma.hbm_to_vmem [thread:$0]  %s190_s0, 32, %s16_s13, [#allocation3], %s131_s23, %s131_s23, %s132_s24  }
  0x14   :  { %126 = dma.done.wait [#allocation3], 512  }
  0x15   :  { %127 = vsyncadd [#allocation3], 4294966784  ;;  %v29_v0 = vld [vmem:[#allocation2] sm:$0xff]  ;;  %v30_v4 = vld [vmem:[#allocation2 + $0x8] sm:$0xff] }
  0x16   :  { %v76_v1 = vld [vmem:[%s191_s1] ss:$0 sm:$0xff]  ;;  %v31_v5 = vld [vmem:[#allocation2 + $0x10] sm:$0xff]  ;;  %v32_v6 = vld [vmem:[#allocation2 + $0x18] sm:$0xff] }
  0x17   :  { %v77_v2 = vld [vmem:[%s192_s2] ss:$0 sm:$0xff]  ;;  %v40_v3 = vmul.f32 %v76_v1, %v29_v0  ;;  %v41_v7 = vmul.f32 %v76_v1, %v30_v4  ;;  %v42_v8 = vmul.f32 %v76_v1, %v31_v5  ;;  %v43_v9 = vmul.f32 %v76_v1, %v32_v6 }
  0x19   :  { %v51_v10 = vadd.f32 %v77_v2, %v40_v3  ;;  %v52_v11 = vadd.f32 %v77_v2, %v41_v7  ;;  %v53_v12 = vadd.f32 %v77_v2, %v42_v8  ;;  %v54_v13 = vadd.f32 %v77_v2, %v43_v9 }
  0x1b   :  { %55 = vst [vmem:[#allocation5] sm:$0xff] %v51_v10  ;;  %56 = vst [vmem:[#allocation5 + $0x8] sm:$0xff] %v52_v11 }
  0x1c   :  { %57 = vst [vmem:[#allocation5 + $0x10] sm:$0xff] %v53_v12  ;;  %58 = vst [vmem:[#allocation5 + $0x18] sm:$0xff] %v54_v13 }
  0x1d   :  { %63 = vsyncadd [#allocation4], 480  ;;  %s133_s0 = smov [#allocation5]  }
  0x1e   :  { %s64_s1 = sshll.u32 %s133_s0, 4  ;;  %s65_s1 = int_to_ptr.vmem [resolvable:$true] %s64_s1 }
  0x1f   :  { %s104_s2 = scalar_lea.vmem %s65_s1, 32  ;;  %s108_s4 = scalar_lea.vmem %s65_s1, 512 }
  0x20   :  { %p105_p8 = scmp.ne.s32.totalorder %s65_s1, %s104_s2  ;;  %p109_p9 = scmp.lt.s32.totalorder %s65_s1, %s65_s1 }
  0x21   :  { %p110_p10 = scmp.lt.s32.totalorder %s108_s4, %s104_s2 }
  0x23   :  { %p111_p11 = por %p110_p10, %p109_p9 }
  0x25   :  { %p112_p12 = pnand %p111_p11, %p105_p8 }
  0x27   :  { %115 = shalt.err (!%p112_p12)
}
  0x28   :  { %s116_s7 = scalar_lea.hbm %s193_s3, 32 }
  0x29   :  { %p117_p13 = scmp.ne.s32.totalorder %s193_s3, %s116_s7  ;;  %p120_p0 = scmp.lt.u32.totalorder %s116_s7, %s193_s3 }
  0x2b   :  { %p122_p1 = pnand %p120_p0, %p117_p13 }
  0x2d   :  { %125 = shalt.err (!%p122_p1)
}
  0x2e   :  { %70 = dma.vmem_to_hbm [thread:$0]  %s65_s1, 32, %s193_s3, [#allocation4], %s131_s23, %s131_s23, %s132_s24  }
  0x2f   :  { %128 = dma.done.wait [#allocation4], 512  }
  0x30   :  { %129 = vsyncadd [#allocation4], 4294966784 }
  0x31   :  { %74 = vsyncpa [#allocation3], 1 }
  0x32   :  { %75 = vsyncpa [#allocation4], 1 }

</bundles_post_ra>
